<compile_context>
chip_gen: v6e
topology: v6e:2x2x1
jax: 0.10.0
libtpu: 0.0.40
codegen_flags: <defaults>
</compile_context>

<pallas_src>
import functools

import jax
import jax.numpy as jnp
from jax.experimental import pallas as pl
from jax.experimental.pallas import tpu as pltpu


def _simam_kernel(x_ref, o_ref, *, inv_n, e_lambda):
    # x_ref: (block_rows, H*W) tile in VMEM. Each row == one (b, c) plane.
    x = x_ref[...].astype(jnp.float32)
    mu = jnp.mean(x, axis=-1, keepdims=True)                  # mean over H*W
    d = (x - mu) * (x - mu)                                   # (x - mu)^2
    s = jnp.sum(d, axis=-1, keepdims=True)                    # sum over H*W
    # Per-row reciprocal of the denominator: one divide per row instead of a
    # divide per element; full-precision since it is only (block_rows, 1).
    inv_denom = pl.reciprocal(4.0 * (s * inv_n + e_lambda), approx=False)
    y = d * inv_denom + 0.5
    o_ref[...] = (x * jax.nn.sigmoid(y)).astype(o_ref.dtype)


def _choose_block_rows(rows, hw, dtype_bytes):
    """Largest aligned block_rows within a ~24 MiB live-VMEM budget, keeping
    >= ~4 grid steps when possible but never shrinking a step below ~1 MiB of
    per-direction DMA."""
    row_align = 16 if dtype_bytes <= 2 else 8   # bf16 packs 16 rows per sublane-pair
    # Live VMEM per tile row: double-buffered input + output tiles in the
    # input dtype, plus ~3 f32 elementwise temporaries inside the kernel body.
    vmem_per_row = hw * (4 * dtype_bytes + 3 * 4)
    budget = 24 * 1024 * 1024
    br = max(row_align, (budget // max(vmem_per_row, 1)) // row_align * row_align)

    # Per-direction HBM traffic per row; each grid step costs ~0.35 us of
    # fixed overhead, so keep per-step DMA >= ~1 MiB before splitting further.
    io_per_row = hw * dtype_bytes
    dma_floor_rows = pl.cdiv(1 << 20, max(io_per_row, 1))
    dma_floor_rows = pl.cdiv(dma_floor_rows, row_align) * row_align

    min_steps = 4
    if rows >= min_steps * row_align:
        steps_cap = max(row_align, (rows // min_steps) // row_align * row_align)
        steps_cap = max(steps_cap, dma_floor_rows)
        br = min(br, steps_cap)
    if br >= rows:
        return rows          # single full-extent block (valid: equals array dim)
    return int(br)


@functools.partial(jax.jit, static_argnames=("e_lambda",))
def simam(x, e_lambda=1e-4):
    """SimAM forward. x: (B, C, H, W). Returns same shape/dtype."""
    b, c, h, w = x.shape
    n = h * w - 1
    # Match the PyTorch reference's edge behavior (divide-by-zero -> non-finite)
    # while avoiding a Python ZeroDivisionError at trace time.
    inv_n = 1.0 / n if n > 0 else float("inf")

    rows = b * c
    hw = h * w
    x2d = x.reshape(rows, hw)
    dtype_bytes = jnp.dtype(x.dtype).itemsize

    # TODO(synk): for tiny spatial stages (H*W < 128, e.g. 7x7 MobileNetV3
    # tails) the lane axis is <50% utilized and loads/stores are masked; a
    # grouped (g planes per lane-row) layout with an in-kernel segmented
    # reduction would be faster for those shapes.
    block_rows = _choose_block_rows(rows, hw, dtype_bytes)

    tile_bytes = block_rows * hw * dtype_bytes
    live_bytes = 4 * tile_bytes + 3 * block_rows * hw * 4
    vmem_limit = int(min(48 * 2**20, max(32 * 2**20, live_bytes + 4 * 2**20)))

    kernel = functools.partial(
        _simam_kernel, inv_n=float(inv_n), e_lambda=float(e_lambda)
    )
    out2d = pl.pallas_call(
        kernel,
        out_shape=jax.ShapeDtypeStruct((rows, hw), x.dtype),
        grid_spec=pltpu.PrefetchScalarGridSpec(
            num_scalar_prefetch=0,
            grid=(pl.cdiv(rows, block_rows),),
            in_specs=[pl.BlockSpec((block_rows, hw), lambda i: (i, 0))],
            out_specs=pl.BlockSpec((block_rows, hw), lambda i: (i, 0)),
        ),
        compiler_params=pltpu.CompilerParams(
            dimension_semantics=("parallel",),
            vmem_limit_bytes=vmem_limit,
        ),
    )(x2d)
    return out2d.reshape(b, c, h, w)


def simam_ref(x, e_lambda=1e-4):
    b, c, h, w = x.shape
    n = w * h - 1
    mu = jnp.mean(x, axis=(2, 3), keepdims=True)
    d = (x - mu) ** 2
    s = jnp.sum(d, axis=(2, 3), keepdims=True)
    y = d / (4.0 * (s / n + e_lambda)) + 0.5
    return x * jax.nn.sigmoid(y)


if __name__ == "__main__":
    key = jax.random.PRNGKey(0)

    # Small canonical shape from the spec.
    x_small = jax.random.normal(key, (2, 4, 16, 16), dtype=jnp.float32)
    out_small = jax.block_until_ready(simam(x_small))
    ref_small = simam_ref(x_small)
    assert out_small.shape == x_small.shape and out_small.dtype == x_small.dtype
    assert jnp.allclose(out_small, ref_small, atol=1e-5, rtol=1e-5), (
        "mismatch vs reference (small shape)"
    )

    # Slightly larger MobileNetV3-like shape to exercise the tiling heuristics.
    key2 = jax.random.PRNGKey(0)
    x_big = jax.random.normal(key2, (2, 32, 28, 28), dtype=jnp.float32)
    out_big = jax.block_until_ready(simam(x_big))
    ref_big = simam_ref(x_big)
    assert out_big.shape == x_big.shape and out_big.dtype == x_big.dtype
    assert jnp.allclose(out_big, ref_big, atol=1e-5, rtol=1e-5), (
        "mismatch vs reference (larger shape)"
    )

    print("KERNEL_OK")
</pallas_src>

<mosaic_0001>
module attributes {stable_mosaic.version = 11 : i64} {
  func.func @_simam_kernel(%arg0: i32, %arg1: memref<8x256xf32, #tpu.memory_space<vmem>>, %arg2: memref<8x256xf32, #tpu.memory_space<vmem>>) attributes {dimension_semantics = [#tpu.dimension_semantics<parallel>], iteration_bounds = array<i64: 1>, scalar_prefetch = 0 : i64, scratch_operands = 0 : i64, tpu.core_type = #tpu.core_type<tc>, window_params = [{transform_indices = @transform_0, window_bounds = array<i64: 8, 256>}, {transform_indices = @transform_1, window_bounds = array<i64: 8, 256>}]} {
    %c0 = arith.constant 0 : index
    %c0_0 = arith.constant 0 : index
    %0 = vector.load %arg1[%c0, %c0_0] : memref<8x256xf32, #tpu.memory_space<vmem>>, vector<8x256xf32>
    %cst = arith.constant dense<0.000000e+00> : vector<8xf32>
    %1 = vector.multi_reduction <add>, %0, %cst [1] : vector<8x256xf32> to vector<8xf32>
    %2 = vector.shape_cast %1 : vector<8xf32> to vector<8x1xf32>
    %cst_1 = arith.constant 2.560000e+02 : f32
    %3 = vector.broadcast %cst_1 : f32 to vector<8x1xf32>
    %4 = arith.divf %2, %3 : vector<8x1xf32>
    %5 = vector.broadcast %4 : vector<8x1xf32> to vector<8x256xf32>
    %6 = arith.subf %0, %5 : vector<8x256xf32>
    %7 = vector.broadcast %4 : vector<8x1xf32> to vector<8x256xf32>
    %8 = arith.subf %0, %7 : vector<8x256xf32>
    %9 = arith.mulf %6, %8 : vector<8x256xf32>
    %cst_2 = arith.constant dense<0.000000e+00> : vector<8xf32>
    %10 = vector.multi_reduction <add>, %9, %cst_2 [1] : vector<8x256xf32> to vector<8xf32>
    %11 = vector.shape_cast %10 : vector<8xf32> to vector<8x1xf32>
    %cst_3 = arith.constant 0.00392156886 : f32
    %12 = vector.broadcast %cst_3 : f32 to vector<8x1xf32>
    %13 = arith.mulf %11, %12 : vector<8x1xf32>
    %cst_4 = arith.constant 9.99999974E-5 : f32
    %14 = vector.broadcast %cst_4 : f32 to vector<8x1xf32>
    %15 = arith.addf %13, %14 : vector<8x1xf32>
    %cst_5 = arith.constant 4.000000e+00 : f32
    %16 = vector.broadcast %cst_5 : f32 to vector<8x1xf32>
    %17 = arith.mulf %16, %15 : vector<8x1xf32>
    %18 = tpu.reciprocal %17 : vector<8x1xf32> -> vector<8x1xf32>
    %19 = vector.broadcast %18 : vector<8x1xf32> to vector<8x256xf32>
    %20 = arith.mulf %9, %19 : vector<8x256xf32>
    %cst_6 = arith.constant 5.000000e-01 : f32
    %21 = vector.broadcast %cst_6 : f32 to vector<8x256xf32>
    %22 = arith.addf %20, %21 : vector<8x256xf32>
    %23 = arith.negf %22 : vector<8x256xf32>
    %24 = math.exp %23 : vector<8x256xf32>
    %cst_7 = arith.constant 1.000000e+00 : f32
    %25 = vector.broadcast %cst_7 : f32 to vector<8x256xf32>
    %26 = arith.addf %25, %24 : vector<8x256xf32>
    %27 = arith.divf %25, %26 : vector<8x256xf32>
    %28 = arith.mulf %0, %27 : vector<8x256xf32>
    %c0_8 = arith.constant 0 : index
    %c0_9 = arith.constant 0 : index
    %29 = vector.load %arg2[%c0_8, %c0_9] : memref<8x256xf32, #tpu.memory_space<vmem>>, vector<8x256xf32>
    tpu.vector_store %arg2[%c0_8, %c0_9], %28 {strides = array<i32>} : memref<8x256xf32, #tpu.memory_space<vmem>>, vector<8x256xf32>,
    return
  }
  func.func @transform_0(%arg0: i32) -> (i32, i32) {
    %c0_i32 = arith.constant 0 : i32
    %c0_i32_0 = arith.constant 0 : i32
    return %arg0, %c0_i32 : i32, i32
  }
  func.func @transform_1(%arg0: i32) -> (i32, i32) {
    %c0_i32 = arith.constant 0 : i32
    %c0_i32_0 = arith.constant 0 : i32
    return %arg0, %c0_i32 : i32, i32
  }
}

</mosaic_0001>

<bundles_post_ra>
// kernel: simam.1
= control target key start
LH: loop header
LB: loop body
LE: loop exit
PB: predicated region body
PF: predicated region fallthrough
CT: control target
= control target key end

     0   :  { %s84_s0 = inlined_call_operand.vmem [shape: f32[8,256], index: 0, kind: input, shape index: {}]   ;;  %s85_s1 = inlined_call_operand.vmem [shape: f32[8,256], index: 1, kind: output, shape index: {}]  }
   0x1   :  { %v8_v0 = vld [vmem:[%s84_s0] sm:$0xff]  ;;  %v9_v1 = vld [vmem:[%s84_s0 + $0x8] sm:$0xff] }
   0x2   :  { %v10_v2 = vadd.f32 %v9_v1, %v8_v0 }
   0x4   :  { %11 = vadd.xlane.f32.xlu0 %v10_v2 }
  0x8d   :  { %v12_v3 = vpop.xlane.xlu0 %11 }
  0x8e   :  { %v14_v4 = vmul.f32 0.00390625, %v12_v3 }
  0x90   :  { %v15_v5 = vsub.f32 %v8_v0, %v14_v4  ;;  %v16_v6 = vsub.f32 %v9_v1, %v14_v4 }
  0x92   :  { %v17_v7 = vmul.f32 %v15_v5, %v15_v5  ;;  %v18_v8 = vmul.f32 %v16_v6, %v16_v6 }
  0x94   :  { %v19_v9 = vadd.f32 %v18_v8, %v17_v7 }
  0x96   :  { %20 = vadd.xlane.f32.xlu0 %v19_v9 }
 0x11f   :  { %v21_v10 = vpop.xlane.xlu0 %20 }
 0x120   :  { %v22_v11 = vmul.f32 0.003921569, %v21_v10 }
 0x122   :  { %v23_v12 = vadd.f32 0.0001, %v22_v11 }
 0x124   :  { %v24_v13 = vmul.f32 4.0, %v23_v12 }
 0x126   :  { %52 = vrcp.f32 %v24_v13 }
 0x133   :  { %v53_v14 = vpop.eup %52 }
 0x134   :  { %v26_v15 = vmul.f32 %v53_v14, %v17_v7  ;;  %v27_v16 = vmul.f32 %v53_v14, %v18_v8 }
 0x136   :  { %v28_v17 = vadd.f32 0.5, %v26_v15  ;;  %v29_v18 = vadd.f32 0.5, %v27_v16 }
 0x138   :  { %v50_v19 = vmul.f32 -1.442695, %v28_v17  ;;  %v51_v20 = vmul.f32 -1.442695, %v29_v18 }
 0x13a   :  { %54 = vpow2.f32 %v50_v19 }
 0x13b   :  { %56 = vpow2.f32 %v51_v20 }
 0x147   :  { %v55_v21 = vpop.eup %54 }
 0x148   :  { %v57_v22 = vpop.eup %56  ;;  %v36_v23 = vadd.f32 1.0, %v55_v21 }
 0x149   :  { %v37_v24 = vadd.f32 1.0, %v57_v22 }
 0x14a   :  { %58 = vrcp.f32 %v36_v23 }
 0x14b   :  { %60 = vrcp.f32 %v37_v24 }
 0x157   :  { %v59_v25 = vpop.eup %58 }
 0x158   :  { %v61_v26 = vpop.eup %60  ;;  %v42_v27 = vmul.f32 %v59_v25, %v8_v0 }
 0x159   :  { %v43_v28 = vmul.f32 %v61_v26, %v9_v1 }
 0x15a   :  { %44 = vst [vmem:[%s85_s1] sm:$0xff] %v42_v27 }
 0x15b   :  { %45 = vst [vmem:[%s85_s1 + $0x8] sm:$0xff] %v43_v28 }

</bundles_post_ra>
